<compile_context>
chip_gen: v6e
topology: v6e:2x2x1
jax: 0.10.0
libtpu: 0.0.40
codegen_flags: <defaults>
</compile_context>

<pallas_src>
import functools

import jax
import jax.numpy as jnp
from jax import lax
from jax.experimental import pallas as pl
from jax.experimental.pallas import tpu as pltpu


# ---------------------------------------------------------------------------
# activations (f32 epilogue)
# ---------------------------------------------------------------------------
def _act(y, activation):
    if activation == "relu":
        return jnp.maximum(y, 0.0)
    elif activation == "tanh":
        return jnp.tanh(y)
    elif activation == "silu":
        return y * jax.nn.sigmoid(y)
    elif activation == "elu":
        # expm1 on the clamped argument: no wasted/overflowing exp on y >> 0
        return jnp.where(y > 0, y, jnp.expm1(jnp.minimum(y, 0.0)))
    elif activation == "gelu":
        # PyTorch nn.GELU default is the exact erf form
        return jax.nn.gelu(y, approximate=False)
    elif activation == "softplus":
        return jax.nn.softplus(y)
    else:
        raise ValueError(f'Unknown act "{activation}"')


# ---------------------------------------------------------------------------
# kernel
# ---------------------------------------------------------------------------
def _linear_layer_kernel(x_ref, w_ref, b_ref, *rest, activation, layer_norm,
                         act_after_norm, skip_connections, eps):
    if layer_norm:
        g_ref, be_ref, o_ref = rest
    else:
        (o_ref,) = rest

    x = x_ref[...]                      # (TB, dim_in), native dtype
    w = w_ref[...]                      # (dim_out, dim_in), native dtype (PyTorch layout)

    # MXU matmul with f32 accumulation: contract dim_in of both operands
    # (x @ W.T) without materializing a transposed weight in HBM.
    y = lax.dot_general(
        x, w,
        dimension_numbers=(((1,), (1,)), ((), ())),
        preferred_element_type=jnp.float32)            # (TB, dim_out) f32
    y = y + b_ref[...].astype(jnp.float32)

    if not act_after_norm:
        y = _act(y, activation)

    if layer_norm:
        mu = jnp.mean(y, axis=-1, keepdims=True)
        var = jnp.mean((y - mu) ** 2, axis=-1, keepdims=True)
        y = (y - mu) * lax.rsqrt(var + eps)
        y = y * g_ref[...].astype(jnp.float32) + be_ref[...].astype(jnp.float32)

    if act_after_norm:
        y = _act(y, activation)

    if skip_connections and y.shape[-1] == x.shape[-1]:
        y = y + x.astype(jnp.float32)

    # cast to output dtype as the very last op
    o_ref[...] = y.astype(o_ref.dtype)


# ---------------------------------------------------------------------------
# wrapper
# ---------------------------------------------------------------------------
_ACT_TRANSCENDENTALS = {"relu": 0, "tanh": 1, "silu": 1, "elu": 1,
                        "gelu": 1, "softplus": 2}


def linear_layer(x, weight, bias, gamma=None, beta=None, *,
                 activation="relu", layer_norm=False, batch_norm=False,
                 act_after_norm=True, skip_connections=False, eps=1e-5,
                 tile_b=256):
    """x: (B, dim_in); weight: (dim_out, dim_in) (PyTorch convention)."""
    if batch_norm:
        # TODO(synk): BatchNorm1d (batch_norm=True) not implemented; default config is off.
        raise NotImplementedError("batch_norm=True is not supported")

    B, dim_in = x.shape
    dim_out, k = weight.shape
    assert k == dim_in, (weight.shape, x.shape)

    # Batch tile: full B for small problems, otherwise a multiple of 8
    # (sublane constraint) sized well under the v7x 64 MiB VMEM budget.
    if B <= tile_b:
        tb = B
    else:
        tb = tile_b
        assert tb % 8 == 0, "tile_b must be a multiple of 8"
    grid_b = pl.cdiv(B, tb)

    b2 = bias.reshape(1, dim_out)

    kernel = functools.partial(
        _linear_layer_kernel,
        activation=activation, layer_norm=layer_norm,
        act_after_norm=act_after_norm, skip_connections=skip_connections,
        eps=eps)

    # Weight / bias / LN params: constant block index -> resident in VMEM
    # across all batch tiles.  x / out tiles stream & pipeline over the grid.
    in_specs = [
        pl.BlockSpec((tb, dim_in), lambda i: (i, 0)),        # x tile
        pl.BlockSpec((dim_out, dim_in), lambda i: (0, 0)),   # weight (resident)
        pl.BlockSpec((1, dim_out), lambda i: (0, 0)),        # bias
    ]
    args = [x, weight, b2]
    if layer_norm:
        assert gamma is not None and beta is not None
        in_specs += [pl.BlockSpec((1, dim_out), lambda i: (0, 0)),
                     pl.BlockSpec((1, dim_out), lambda i: (0, 0))]
        args += [gamma.reshape(1, dim_out), beta.reshape(1, dim_out)]

    # Advisory cost estimate so XLA can schedule surrounding ops.
    transc = _ACT_TRANSCENDENTALS[activation] * B * dim_out
    if layer_norm:
        transc += B
    bytes_accessed = sum(int(a.size) * a.dtype.itemsize for a in args)
    bytes_accessed += B * dim_out * jnp.dtype(x.dtype).itemsize
    cost = pl.CostEstimate(flops=2 * B * dim_in * dim_out + 4 * B * dim_out,
                           transcendentals=transc,
                           bytes_accessed=bytes_accessed)

    return pl.pallas_call(
        kernel,
        out_shape=jax.ShapeDtypeStruct((B, dim_out), x.dtype),
        grid=(grid_b,),
        in_specs=in_specs,
        out_specs=pl.BlockSpec((tb, dim_out), lambda i: (i, 0)),
        compiler_params=pltpu.CompilerParams(
            dimension_semantics=("parallel",)),   # shards batch tiles on v7x's 2 TCs
        cost_estimate=cost,
    )(*args)


# ---------------------------------------------------------------------------
# pure-JAX reference
# ---------------------------------------------------------------------------
def _reference(x, weight, bias, gamma=None, beta=None, *,
               activation="relu", layer_norm=False, act_after_norm=True,
               skip_connections=False, eps=1e-5):
    y = x.astype(jnp.float32) @ weight.astype(jnp.float32).T + bias
    if not act_after_norm:
        y = _act(y, activation)
    if layer_norm:
        mu = jnp.mean(y, axis=-1, keepdims=True)
        var = jnp.mean((y - mu) ** 2, axis=-1, keepdims=True)
        y = (y - mu) * lax.rsqrt(var + eps) * gamma + beta
    if act_after_norm:
        y = _act(y, activation)
    if skip_connections and y.shape[-1] == x.shape[-1]:
        y = y + x.astype(jnp.float32)
    return y.astype(x.dtype)


if __name__ == "__main__":
    key = jax.random.PRNGKey(0)
    k_x, k_w, k_b, k_x2 = jax.random.split(key, 4)

    # ---- Config 1 & 2: small module-default shapes -------------------------
    B, dim_in, dim_out = 16, 32, 32
    x = jax.random.normal(k_x, (B, dim_in), dtype=jnp.float32)
    bound = 1.0 / jnp.sqrt(float(dim_in))
    weight = jax.random.uniform(k_w, (dim_out, dim_in), jnp.float32, -bound, bound)
    bias = jax.random.uniform(k_b, (dim_out,), jnp.float32, -bound, bound)
    gamma = jnp.ones((dim_out,), jnp.float32)
    beta = jnp.zeros((dim_out,), jnp.float32)

    # Config 1: module defaults (relu only, no LN / skip).
    out1 = linear_layer(x, weight, bias)
    jax.block_until_ready(out1)
    ref1 = _reference(x, weight, bias)
    assert jnp.allclose(out1, ref1, atol=1e-5, rtol=1e-5)

    # Config 2: layer_norm=True, skip_connections=True, gelu.
    out2 = linear_layer(x, weight, bias, gamma, beta,
                        activation="gelu", layer_norm=True,
                        skip_connections=True)
    jax.block_until_ready(out2)
    ref2 = _reference(x, weight, bias, gamma, beta,
                      activation="gelu", layer_norm=True,
                      skip_connections=True)
    assert jnp.allclose(out2, ref2, atol=1e-5, rtol=1e-5)

    # ---- Config 3: batch-tiled path (grid > 1, "parallel" batch axis) ------
    B3, d3 = 256, 64
    x3 = jax.random.normal(k_x2, (B3, d3), dtype=jnp.float32)
    w3 = jax.random.uniform(k_w, (d3, d3), jnp.float32, -0.1, 0.1)
    b3 = jax.random.uniform(k_b, (d3,), jnp.float32, -0.1, 0.1)
    out3 = linear_layer(x3, w3, b3, activation="silu",
                        skip_connections=True, tile_b=128)   # grid_b = 2
    jax.block_until_ready(out3)
    ref3 = _reference(x3, w3, b3, activation="silu", skip_connections=True)
    assert jnp.allclose(out3, ref3, atol=1e-5, rtol=1e-5)

    print("KERNEL_OK")
</pallas_src>

<mosaic_0001>
module attributes {stable_mosaic.version = 11 : i64} {
  func.func @_linear_layer_kernel(%arg0: i32, %arg1: memref<16x32xf32, #tpu.memory_space<vmem>>, %arg2: memref<32x32xf32, #tpu.memory_space<vmem>>, %arg3: memref<1x32xf32, #tpu.memory_space<vmem>>, %arg4: memref<16x32xf32, #tpu.memory_space<vmem>>) attributes {dimension_semantics = [#tpu.dimension_semantics<parallel>], iteration_bounds = array<i64: 1>, scalar_prefetch = 0 : i64, scratch_operands = 0 : i64, tpu.core_type = #tpu.core_type<tc>, window_params = [{transform_indices = @transform_0, window_bounds = array<i64: 16, 32>}, {pipeline_mode = #tpu.pipeline_mode<synchronous>, transform_indices = @transform_1, window_bounds = array<i64: 32, 32>}, {pipeline_mode = #tpu.pipeline_mode<synchronous>, transform_indices = @transform_2, window_bounds = array<i64: 1, 32>}, {transform_indices = @transform_3, window_bounds = array<i64: 16, 32>}]} {
    %c0 = arith.constant 0 : index
    %c0_0 = arith.constant 0 : index
    %0 = vector.load %arg1[%c0, %c0_0] : memref<16x32xf32, #tpu.memory_space<vmem>>, vector<16x32xf32>
    %c0_1 = arith.constant 0 : index
    %c0_2 = arith.constant 0 : index
    %1 = vector.load %arg2[%c0_1, %c0_2] : memref<32x32xf32, #tpu.memory_space<vmem>>, vector<32x32xf32>
    %cst = arith.constant dense<0.000000e+00> : vector<16x32xf32>
    %2 = tpu.matmul %0, %1, %cst {dimension_numbers = #tpu.dot_dimension_numbers<[1], [1], [0], [0], [0, 0, 1, 0], [], []>} : vector<16x32xf32>, vector<32x32xf32>, vector<16x32xf32> -> vector<16x32xf32>
    %c0_3 = arith.constant 0 : index
    %c0_4 = arith.constant 0 : index
    %3 = vector.load %arg3[%c0_3, %c0_4] : memref<1x32xf32, #tpu.memory_space<vmem>>, vector<1x32xf32>
    %4 = vector.broadcast %3 : vector<1x32xf32> to vector<16x32xf32>
    %5 = arith.addf %2, %4 : vector<16x32xf32>
    %cst_5 = arith.constant 0.000000e+00 : f32
    %6 = vector.broadcast %cst_5 : f32 to vector<16x32xf32>
    %7 = arith.maximumf %5, %6 : vector<16x32xf32>
    %c0_6 = arith.constant 0 : index
    %c0_7 = arith.constant 0 : index
    %8 = vector.load %arg4[%c0_6, %c0_7] : memref<16x32xf32, #tpu.memory_space<vmem>>, vector<16x32xf32>
    tpu.vector_store %arg4[%c0_6, %c0_7], %7 {strides = array<i32>} : memref<16x32xf32, #tpu.memory_space<vmem>>, vector<16x32xf32>,
    return
  }
  func.func @transform_0(%arg0: i32) -> (i32, i32) {
    %c0_i32 = arith.constant 0 : i32
    %c0_i32_0 = arith.constant 0 : i32
    return %arg0, %c0_i32 : i32, i32
  }
  func.func @transform_1(%arg0: i32) -> (i32, i32) {
    %c0_i32 = arith.constant 0 : i32
    %c0_i32_0 = arith.constant 0 : i32
    %c0_i32_1 = arith.constant 0 : i32
    return %c0_i32, %c0_i32_0 : i32, i32
  }
  func.func @transform_2(%arg0: i32) -> (i32, i32) {
    %c0_i32 = arith.constant 0 : i32
    %c0_i32_0 = arith.constant 0 : i32
    %c0_i32_1 = arith.constant 0 : i32
    return %c0_i32, %c0_i32_0 : i32, i32
  }
  func.func @transform_3(%arg0: i32) -> (i32, i32) {
    %c0_i32 = arith.constant 0 : i32
    %c0_i32_0 = arith.constant 0 : i32
    return %arg0, %c0_i32 : i32, i32
  }
}

</mosaic_0001>

<bundles_post_ra>
// kernel: tpu_custom_call.1
= control target key start
LH: loop header
LB: loop body
LE: loop exit
PB: predicated region body
PF: predicated region fallthrough
CT: control target
= control target key end

     0   :  { %8 = vsyncpa [#allocation3], 0  ;;  %s325_s0 = inlined_call_operand.hbm [shape: f32[16,32], index: 0, kind: input, shape index: {}]   ;;  %s326_s1 = inlined_call_operand.hbm [shape: f32[32,32], index: 1, kind: input, shape index: {}]   ;;  %s327_s2 = inlined_call_operand.vmem [shape: f32[1,32], index: 2, kind: input, shape index: {}]   ;;  %s328_s3 = inlined_call_operand.hbm [shape: f32[16,32], index: 3, kind: output, shape index: {}]  }
   0x1   :  { %9 = vsyncpa [#allocation6], 0 }
   0x2   :  { %10 = vsyncpa [#allocation4], 0  ;;  %s267_s12 = smov [#allocation2]  }
   0x3   :  { %s16_s13 = sshll.u32 %s267_s12, 4  ;;  %s17_s13 = int_to_ptr.vmem [resolvable:$true] %s16_s13 }
   0x4   :  { %s209_s14 = scalar_lea.vmem %s17_s13, 256  ;;  %p214_p1 = scmp.lt.s32.totalorder %s17_s13, %s17_s13 }
   0x5   :  { %p210_p0 = scmp.ne.s32.totalorder %s17_s13, %s209_s14  ;;  %p215_p2 = scmp.lt.s32.totalorder %s209_s14, %s209_s14 }
   0x7   :  { %p216_p3 = por %p215_p2, %p214_p1 }
   0x9   :  { %p217_p4 = pnand %p216_p3, %p210_p0 }
   0xb   :  { %220 = shalt.err (!%p217_p4)
}
   0xc   :  { %s268_s15 = smov 128   ;;  %s269_s16 = smov 8  }
   0xd   :  { %22 = dma.hbm_to_vmem [thread:$0]  %s325_s0, 256, %s17_s13, [#allocation3], %s268_s15, %s268_s15, %s269_s16  }
   0xe   :  { %s270_s19 = smov [#allocation5]  }
   0xf   :  { %s28_s20 = sshll.u32 %s270_s19, 4  ;;  %s29_s20 = int_to_ptr.vmem [resolvable:$true] %s28_s20 }
  0x10   :  { %s229_s21 = scalar_lea.vmem %s29_s20, 512  ;;  %p234_p6 = scmp.lt.s32.totalorder %s29_s20, %s29_s20 }
  0x11   :  { %p230_p5 = scmp.ne.s32.totalorder %s29_s20, %s229_s21  ;;  %p235_p7 = scmp.lt.s32.totalorder %s229_s21, %s229_s21 }
  0x13   :  { %p236_p8 = por %p235_p7, %p234_p6 }
  0x15   :  { %p237_p9 = pnand %p236_p8, %p230_p5 }
  0x17   :  { %240 = shalt.err (!%p237_p9)
}
  0x18   :  { %34 = dma.hbm_to_vmem [thread:$0]  %s326_s1, 512, %s29_s20, [#allocation6], %s268_s15, %s268_s15, %s269_s16  }
  0x19   :  { %261 = dma.done.wait [#allocation3], 256  }
  0x1a   :  { %262 = vsyncadd [#allocation3], 4294967040 }
  0x1b   :  { %263 = dma.done.wait [#allocation6], 512  }
  0x1c   :  { %264 = vsyncadd [#allocation6], 4294966784  ;;  %vm56_vm0 = vcmask 261120   ;;  %v48_v0 = vld [vmem:[#allocation5 + $0x18] sm:$0xff]  ;;  %v47_v1 = vld [vmem:[#allocation5 + $0x10] sm:$0xff]  ;;  %s271_s24 = smov [#allocation7]  }
  0x1d   :  { %185 = vmatprep.subr.msk.mxu0 %vm56_vm0, %v48_v0  ;;  %v43_v2 = vld [vmem:[#allocation2] sm:$0xff]  ;;  %v46_v3 = vld [vmem:[#allocation5 + $0x8] sm:$0xff]  ;;  %v45_v4 = vld [vmem:[#allocation5] sm:$0xff]  ;;  %s159_s25 = sshll.u32 %s271_s24, 4  ;;  %s160_s25 = int_to_ptr.vmem [resolvable:$true] %s159_s25 }
  0x1e   :  { %186 = vmatpush3.xpose.msk.msra.mxu0 %vm56_vm0, %v48_v0  ;;  %193 = vmatprep.mubr.msk.f32.mxu0 %vm56_vm0, %v43_v2  ;;  %v44_v5 = vld [vmem:[#allocation2 + $0x8] sm:$0xff]  ;;  %v172_v6 = vld [vmem:[%s327_s2] ss:$0 sm:$0xff]  ;;  %s241_s26 = scalar_lea.vmem %s160_s25, 256  ;;  %p246_p11 = scmp.lt.s32.totalorder %s160_s25, %s160_s25 }
  0x1f   :  { %187 = vmatprep.subr.msk.mxu0 %vm56_vm0, %v47_v1  ;;  %p242_p10 = scmp.ne.s32.totalorder %s160_s25, %s241_s26  ;;  %p247_p12 = scmp.lt.s32.totalorder %s241_s26, %s241_s26 }
  0x21   :  { %p248_p13 = por %p247_p12, %p246_p11 }
  0x22   :  { %188 = vmatpush3.xpose.msk.msra.mxu0 %vm56_vm0, %v47_v1 }
  0x23   :  { %189 = vmatprep.subr.msk.mxu0 %vm56_vm0, %v46_v3  ;;  %p249_p0 = pnand %p248_p13, %p242_p10 }
  0x26   :  { %190 = vmatpush3.xpose.msk.msra.mxu0 %vm56_vm0, %v46_v3 }
  0x27   :  { %191 = vmatprep.subr.msk.mxu0 %vm56_vm0, %v45_v4 }
  0x2a   :  { %192 = vmatpush3.xpose.msk.msra.mxu0 %vm56_vm0, %v45_v4 }
  0x2d   :  { %194 = vmatmul.mubr.msk.f32.vlgmr.msra.gmra.mxu0 %vm56_vm0, %v44_v5 }
  0xed   :  { %v195_v7 = vpop.f32.mrf.mxu0 }
  0xee   :  { %v147_v8 = vadd.f32 %v195_v7, %v172_v6 }
  0xef   :  { %v141_v9 = vpop.f32.mrf.mxu0 }
  0xf0   :  { %v151_v10 = vmax.f32 %v147_v8, 0.0  ;;  %v142_v11 = vadd.f32 %v172_v6, %v141_v9 }
  0xf2   :  { %153 = vst.msk [vmem:[#allocation7 + $0x8] sm:$0xff] %vm56_vm0, %v151_v10  ;;  %v150_v12 = vmax.f32 %v142_v11, 0.0 }
  0xf4   :  { %152 = vst.msk [vmem:[#allocation7] sm:$0xff] %vm56_vm0, %v150_v12 }
  0xf5   :  { %252 = shalt.err (!%p249_p0)
}
  0xf6   :  { %165 = dma.vmem_to_hbm [thread:$0]  %s160_s25, 256, %s328_s3, [#allocation4], %s268_s15, %s268_s15, %s269_s16  }
  0xf7   :  { %265 = dma.done.wait [#allocation4], 256  }
  0xf8   :  { %266 = vsyncadd [#allocation4], 4294967040 }
  0xf9   :  { %169 = vsyncpa [#allocation3], 1 }
  0xfa   :  { %170 = vsyncpa [#allocation6], 1 }
  0xfb   :  { %171 = vsyncpa [#allocation4], 1 }

</bundles_post_ra>
